<compile_context>
chip_gen: v7x
topology: tpu7x:2x2x1
jax: 0.10.0
libtpu: 0.0.40
codegen_flags: <defaults>
</compile_context>

<pallas_src>
import functools

import jax
import jax.numpy as jnp
from jax.experimental import pallas as pl
from jax.experimental.pallas import tpu as pltpu


def _round_up(x, m):
    return ((x + m - 1) // m) * m


def _esmm_kernel(cat_ref, num_ref,
                 w1cat_ref, w1n_ref, w2_ref, wt1_ref, woutt_ref,
                 bias_ref, bout_ref,
                 out_ref):
    cd = w1cat_ref.dtype
    cat = cat_ref[...]                                   # [TB, n_cat] int32, pre-shifted
    tb, n_cat = cat.shape
    total, h0 = w1cat_ref.shape
    h1d = w2_ref.shape[1]
    t2 = wt1_ref.shape[1]

    # Multi-hot selector: per-table offset ranges are disjoint -> OR of compares.
    col = jax.lax.broadcasted_iota(jnp.int32, (tb, total), 1)
    sel = col == cat[:, 0:1]
    for i in range(1, n_cat):                            # n_cat is small & static
        sel = sel | (col == cat[:, i:i + 1])
    onehot = sel.astype(jnp.float32).astype(cd)          # cast once

    bias = bias_ref[...]                                 # [1, h0 + h1d + t2] f32
    b1 = bias[:, :h0]
    b2 = bias[:, h0:h0 + h1d]
    bt1 = bias[:, h0 + h1d:h0 + h1d + t2]

    # --- SharedBottom layer 1 (embedding tables pre-folded into W1cat) ---
    h = jnp.dot(onehot, w1cat_ref[...], preferred_element_type=jnp.float32)
    h = h + jnp.dot(num_ref[...], w1n_ref[...], preferred_element_type=jnp.float32)
    h = jnp.maximum(h + b1, 0.0)                         # [TB, H0] (f32)

    # --- SharedBottom layer 2 ---
    h = jnp.dot(h.astype(cd), w2_ref[...], preferred_element_type=jnp.float32) + b2
    h = jnp.maximum(h, 0.0)                              # [TB, H1]

    # --- Fused CTR|CVR tower hidden layer ---
    t = jnp.dot(h.astype(cd), wt1_ref[...], preferred_element_type=jnp.float32) + bt1
    t = jnp.maximum(t, 0.0)                              # [TB, 2T]

    # --- Fused block-diagonal output layer, computed directly transposed so the
    #     writeback is lane-dense: [2, 2T] x [TB, 2T]^T -> [2, TB]. ---
    logits_t = jax.lax.dot_general(
        woutt_ref[...], t.astype(cd),
        dimension_numbers=(((1,), (1,)), ((), ())),
        preferred_element_type=jnp.float32)              # [2, TB]
    logits_t = logits_t + bout_ref[...]                  # [2, 1] broadcasts over lanes
    out_ref[...] = 1.0 / (1.0 + jnp.exp(-logits_t))


def pack_params(params, compute_dtype=jnp.float32):
    """One-time parameter packing (call once, outside the jitted forward).

    compute_dtype affects only the MXU operands; bias/elementwise stay f32.
    bfloat16 is recommended on v6e/v7x; f32 matches the reference bit-tightly.
    """
    tables = params["emb_tables"]
    cat_dim = sum(int(t.shape[1]) for t in tables)
    total = sum(int(t.shape[0]) for t in tables)

    w1 = params["w1"].astype(jnp.float32)
    H0 = w1.shape[1]
    w1c = w1[:cat_dim]                    # rows matching the concatenated embeddings
    w1n = w1[cat_dim:]                    # rows matching the numerical features

    # Fold every embedding table into W1's matching row block (exact, done in f32):
    #   x_cat @ w1c == onehot @ (blockdiag(tables) @ w1c) == onehot @ w1cat
    w1cat = jnp.zeros((total, H0), jnp.float32)
    offsets, sizes = [], []
    r = c = 0
    for tbl in tables:
        n, d = tbl.shape
        w1cat = w1cat.at[r:r + n].set(tbl.astype(jnp.float32) @ w1c[c:c + d])
        offsets.append(r)
        sizes.append(n)
        r += n
        c += d

    T = params["wc1"].shape[1]
    # Fused tower hidden layer [H1, 2T]; fused output layer stored pre-transposed
    # [2, 2T] (block-diagonal: row 0 = CTR weights, row 1 = CVR weights).
    wt1 = jnp.concatenate([params["wc1"], params["wv1"]], axis=1).astype(jnp.float32)
    wout_t = jnp.zeros((2, 2 * T), jnp.float32)
    wout_t = wout_t.at[0, :T].set(params["wc2"][0])
    wout_t = wout_t.at[1, T:].set(params["wv2"][0])

    bias = jnp.concatenate(
        [params["b1"], params["b2"], params["bc1"], params["bv1"]],
        axis=1).astype(jnp.float32)                       # [1, H0 + H1 + 2T]
    bout = jnp.concatenate([params["bc2"], params["bv2"]],
                           axis=0).astype(jnp.float32)    # [2, 1]

    cd = compute_dtype
    return {
        "w1cat": w1cat.astype(cd),
        "w1n": w1n.astype(cd),
        "w2": params["w2"].astype(cd),
        "wt1": wt1.astype(cd),
        "wout_t": wout_t.astype(cd),
        "bias": bias,
        "bout": bout,
        "offsets": jnp.asarray(offsets, jnp.int32),
        "sizes": jnp.asarray(sizes, jnp.int32),
    }


@functools.partial(jax.jit, static_argnames=("block_b",))
def esmm_forward(categorical_feats, numerical_feats, packed, *, block_b=2048):
    B, n_cat = categorical_feats.shape
    num_numerical = numerical_feats.shape[1]

    w1cat, w1n, w2 = packed["w1cat"], packed["w1n"], packed["w2"]
    wt1, wout_t = packed["wt1"], packed["wout_t"]
    bias, bout = packed["bias"], packed["bout"]
    cd = w1cat.dtype
    total, H0 = w1cat.shape
    H1 = w2.shape[1]
    T2 = wt1.shape[1]

    # ---- Batch tiling: bb is a multiple of 128 (lane-dense transposed output);
    #      cap at ~B/2 so medium/large batches get >= 2 grid steps and megacore
    #      ("parallel") can split them across the two v7x TensorCores. ----
    bb = _round_up(min(block_b, max(128, (B + 1) // 2)), 128)
    B_pad = _round_up(B, bb)
    grid = (B_pad // bb,)

    # Offsets pre-added (and indices clamped) in the wrapper: drops per-feature
    # lane-broadcast adds from the kernel's multi-hot build.
    cat_in = jnp.clip(categorical_feats.astype(jnp.int32), 0,
                      packed["sizes"] - 1) + packed["offsets"]
    num_in = numerical_feats.astype(cd)
    if B_pad != B:
        cat_in = jnp.pad(cat_in, ((0, B_pad - B), (0, 0)))   # padded rows: finite junk
        num_in = jnp.pad(num_in, ((0, B_pad - B), (0, 0)))

    weights = [w1cat, w1n, w2, wt1, wout_t, bias, bout]

    flops = 2 * B_pad * (total * H0 + num_numerical * H0 + H0 * H1 + H1 * T2 + T2 * 2)
    bytes_accessed = (cat_in.size * 4 + num_in.size * num_in.dtype.itemsize
                      + sum(int(w.size) * w.dtype.itemsize for w in weights)
                      + B_pad * 2 * 4)

    out = pl.pallas_call(
        _esmm_kernel,
        out_shape=jax.ShapeDtypeStruct((2, B_pad), jnp.float32),
        grid=grid,
        in_specs=[pl.BlockSpec((bb, n_cat), lambda i: (i, 0)),
                  pl.BlockSpec((bb, num_numerical), lambda i: (i, 0))]
                 + [pl.BlockSpec(w.shape, lambda i: (0, 0)) for w in weights],
        out_specs=pl.BlockSpec((2, bb), lambda i: (0, i)),
        compiler_params=pltpu.CompilerParams(
            dimension_semantics=("parallel",),
            vmem_limit_bytes=32 * 1024 * 1024),
        cost_estimate=pl.CostEstimate(
            flops=int(flops),
            transcendentals=int(2 * B_pad),
            bytes_accessed=int(bytes_accessed)),
    )(cat_in, num_in, *weights)

    out = out[:, :B]
    return out[0][:, None], out[1][:, None]


def init_params(key, embedding_sizes, num_numerical, hidden_dims, task_hidden):
    cat_dim = sum(d for _, d in embedding_sizes)
    input_dim = cat_dim + num_numerical
    H0, H1 = hidden_dims
    T = task_hidden[0]
    ks = jax.random.split(key, 16)
    s = 0.1
    p = {}
    p["emb_tables"] = [
        s * jax.random.normal(ks[i], (n, d), jnp.float32)
        for i, (n, d) in enumerate(embedding_sizes)
    ]
    i = len(embedding_sizes)
    # Linear weights stored [in, out] (pre-transposed vs PyTorch's [out, in]).
    p["w1"] = s * jax.random.normal(ks[i + 0], (input_dim, H0), jnp.float32)
    p["b1"] = s * jax.random.normal(ks[i + 1], (1, H0), jnp.float32)
    p["w2"] = s * jax.random.normal(ks[i + 2], (H0, H1), jnp.float32)
    p["b2"] = s * jax.random.normal(ks[i + 3], (1, H1), jnp.float32)
    p["wc1"] = s * jax.random.normal(ks[i + 4], (H1, T), jnp.float32)
    p["bc1"] = s * jax.random.normal(ks[i + 5], (1, T), jnp.float32)
    p["wc2"] = s * jax.random.normal(ks[i + 6], (1, T), jnp.float32)   # Linear(T,1).weight
    p["bc2"] = s * jax.random.normal(ks[i + 7], (1, 1), jnp.float32)
    p["wv1"] = s * jax.random.normal(ks[i + 8], (H1, T), jnp.float32)
    p["bv1"] = s * jax.random.normal(ks[i + 9], (1, T), jnp.float32)
    p["wv2"] = s * jax.random.normal(ks[i + 10], (1, T), jnp.float32)
    p["bv2"] = s * jax.random.normal(ks[i + 11], (1, 1), jnp.float32)
    return p


def esmm_reference(categorical_feats, numerical_feats, params):
    """Pure-JAX reference matching the PyTorch forward."""
    cat_embs = [jnp.take(tbl, categorical_feats[:, i], axis=0)
                for i, tbl in enumerate(params["emb_tables"])]
    x = jnp.concatenate(cat_embs + [numerical_feats], axis=-1)
    h = jax.nn.relu(x @ params["w1"] + params["b1"])
    h = jax.nn.relu(h @ params["w2"] + params["b2"])
    c = jax.nn.relu(h @ params["wc1"] + params["bc1"])
    p_ctr = jax.nn.sigmoid(c @ params["wc2"].T + params["bc2"])
    v = jax.nn.relu(h @ params["wv1"] + params["bv1"])
    p_cvr = jax.nn.sigmoid(v @ params["wv2"].T + params["bv2"])
    return p_ctr, p_cvr


if __name__ == "__main__":
    embedding_sizes = [(10, 8), (20, 8), (15, 8)]   # (num_unique, emb_dim)
    num_numerical = 8
    hidden_dims = [32, 32]
    task_tower_hidden_dims = [32]
    B = 200          # not a multiple of the 128-row batch tile; forces 2 grid steps

    key = jax.random.PRNGKey(0)
    kp, kc, kn = jax.random.split(key, 3)
    params = init_params(kp, embedding_sizes, num_numerical,
                         hidden_dims, task_tower_hidden_dims)

    categorical_feats = jnp.stack(
        [jax.random.randint(jax.random.fold_in(kc, i), (B,), 0, n)
         for i, (n, _) in enumerate(embedding_sizes)], axis=1).astype(jnp.int32)
    numerical_feats = jax.random.normal(kn, (B, num_numerical), jnp.float32)

    # ----- f32 path: tight check against the pure-JAX / PyTorch-equivalent reference.
    packed_f32 = pack_params(params, compute_dtype=jnp.float32)   # packed ONCE
    p_ctr, p_cvr = esmm_forward(categorical_feats, numerical_feats, packed_f32)
    jax.block_until_ready((p_ctr, p_cvr))

    r_ctr, r_cvr = esmm_reference(categorical_feats, numerical_feats, params)
    assert p_ctr.shape == (B, 1) and p_cvr.shape == (B, 1)
    assert jnp.allclose(p_ctr, r_ctr, atol=2e-5, rtol=2e-5), \
        float(jnp.max(jnp.abs(p_ctr - r_ctr)))
    assert jnp.allclose(p_cvr, r_cvr, atol=2e-5, rtol=2e-5), \
        float(jnp.max(jnp.abs(p_cvr - r_cvr)))

    # ----- bf16 MXU-operand path (recommended on v6e/v7x); loose tolerance.
    packed_bf16 = pack_params(params, compute_dtype=jnp.bfloat16)
    b_ctr, b_cvr = esmm_forward(categorical_feats, numerical_feats, packed_bf16)
    jax.block_until_ready((b_ctr, b_cvr))
    assert float(jnp.max(jnp.abs(b_ctr - r_ctr))) < 2e-2
    assert float(jnp.max(jnp.abs(b_cvr - r_cvr))) < 2e-2

    print("KERNEL_OK")
</pallas_src>

<mosaic_0001>
module attributes {stable_mosaic.version = 11 : i64} {
  func.func @_esmm_kernel(%arg0: i32, %arg1: memref<128x3xi32, #tpu.memory_space<vmem>>, %arg2: memref<128x8xf32, #tpu.memory_space<vmem>>, %arg3: memref<45x32xf32, #tpu.memory_space<vmem>>, %arg4: memref<8x32xf32, #tpu.memory_space<vmem>>, %arg5: memref<32x32xf32, #tpu.memory_space<vmem>>, %arg6: memref<32x64xf32, #tpu.memory_space<vmem>>, %arg7: memref<2x64xf32, #tpu.memory_space<vmem>>, %arg8: memref<1x128xf32, #tpu.memory_space<vmem>>, %arg9: memref<2x1xf32, #tpu.memory_space<vmem>>, %arg10: memref<2x128xf32, #tpu.memory_space<vmem>>) attributes {dimension_semantics = [#tpu.dimension_semantics<parallel>], iteration_bounds = array<i64: 2>, scalar_prefetch = 0 : i64, scratch_operands = 0 : i64, tpu.core_type = #tpu.core_type<tc>, window_params = [{transform_indices = @transform_0, window_bounds = array<i64: 128, 3>}, {transform_indices = @transform_1, window_bounds = array<i64: 128, 8>}, {pipeline_mode = #tpu.pipeline_mode<synchronous>, transform_indices = @transform_2, window_bounds = array<i64: 45, 32>}, {pipeline_mode = #tpu.pipeline_mode<synchronous>, transform_indices = @transform_3, window_bounds = array<i64: 8, 32>}, {pipeline_mode = #tpu.pipeline_mode<synchronous>, transform_indices = @transform_4, window_bounds = array<i64: 32, 32>}, {pipeline_mode = #tpu.pipeline_mode<synchronous>, transform_indices = @transform_5, window_bounds = array<i64: 32, 64>}, {pipeline_mode = #tpu.pipeline_mode<synchronous>, transform_indices = @transform_6, window_bounds = array<i64: 2, 64>}, {pipeline_mode = #tpu.pipeline_mode<synchronous>, transform_indices = @transform_7, window_bounds = array<i64: 1, 128>}, {pipeline_mode = #tpu.pipeline_mode<synchronous>, transform_indices = @transform_8, window_bounds = array<i64: 2, 1>}, {transform_indices = @transform_9, window_bounds = array<i64: 2, 128>}]} {
    %c0 = arith.constant 0 : index
    %c0_0 = arith.constant 0 : index
    %0 = vector.load %arg1[%c0, %c0_0] : memref<128x3xi32, #tpu.memory_space<vmem>>, vector<128x3xi32>
    %1 = tpu.iota {dimensions = array<i32: 1>} : vector<128x45xi32>
    %2 = vector.extract_strided_slice %0 {offsets = [0, 0], sizes = [128, 1], strides = [1, 1]} : vector<128x3xi32> to vector<128x1xi32>
    %3 = vector.broadcast %2 : vector<128x1xi32> to vector<128x45xi32>
    %4 = arith.cmpi eq, %1, %3 : vector<128x45xi32>
    %5 = vector.extract_strided_slice %0 {offsets = [0, 1], sizes = [128, 1], strides = [1, 1]} : vector<128x3xi32> to vector<128x1xi32>
    %6 = vector.broadcast %5 : vector<128x1xi32> to vector<128x45xi32>
    %7 = arith.cmpi eq, %1, %6 : vector<128x45xi32>
    %8 = arith.ori %4, %7 : vector<128x45xi1>
    %9 = vector.extract_strided_slice %0 {offsets = [0, 2], sizes = [128, 1], strides = [1, 1]} : vector<128x3xi32> to vector<128x1xi32>
    %10 = vector.broadcast %9 : vector<128x1xi32> to vector<128x45xi32>
    %11 = arith.cmpi eq, %1, %10 : vector<128x45xi32>
    %12 = arith.ori %8, %11 : vector<128x45xi1>
    %13 = arith.extui %12 : vector<128x45xi1> to vector<128x45xi32>
    %14 = arith.sitofp %13 : vector<128x45xi32> to vector<128x45xf32>
    %c0_1 = arith.constant 0 : index
    %c0_2 = arith.constant 0 : index
    %15 = vector.load %arg8[%c0_1, %c0_2] : memref<1x128xf32, #tpu.memory_space<vmem>>, vector<1x128xf32>
    %16 = vector.extract_strided_slice %15 {offsets = [0, 0], sizes = [1, 32], strides = [1, 1]} : vector<1x128xf32> to vector<1x32xf32>
    %17 = vector.extract_strided_slice %15 {offsets = [0, 32], sizes = [1, 32], strides = [1, 1]} : vector<1x128xf32> to vector<1x32xf32>
    %18 = vector.extract_strided_slice %15 {offsets = [0, 64], sizes = [1, 64], strides = [1, 1]} : vector<1x128xf32> to vector<1x64xf32>
    %c0_3 = arith.constant 0 : index
    %c0_4 = arith.constant 0 : index
    %19 = vector.load %arg3[%c0_3, %c0_4] : memref<45x32xf32, #tpu.memory_space<vmem>>, vector<45x32xf32>
    %cst = arith.constant dense<0.000000e+00> : vector<128x32xf32>
    %20 = tpu.matmul %14, %19, %cst {dimension_numbers = #tpu.dot_dimension_numbers<[1], [0], [0], [1], [0, 0, 1, 1], [], []>} : vector<128x45xf32>, vector<45x32xf32>, vector<128x32xf32> -> vector<128x32xf32>
    %c0_5 = arith.constant 0 : index
    %c0_6 = arith.constant 0 : index
    %21 = vector.load %arg2[%c0_5, %c0_6] : memref<128x8xf32, #tpu.memory_space<vmem>>, vector<128x8xf32>
    %c0_7 = arith.constant 0 : index
    %c0_8 = arith.constant 0 : index
    %22 = vector.load %arg4[%c0_7, %c0_8] : memref<8x32xf32, #tpu.memory_space<vmem>>, vector<8x32xf32>
    %cst_9 = arith.constant dense<0.000000e+00> : vector<128x32xf32>
    %23 = tpu.matmul %21, %22, %cst_9 {dimension_numbers = #tpu.dot_dimension_numbers<[1], [0], [0], [1], [0, 0, 1, 1], [], []>} : vector<128x8xf32>, vector<8x32xf32>, vector<128x32xf32> -> vector<128x32xf32>
    %24 = arith.addf %20, %23 : vector<128x32xf32>
    %25 = vector.broadcast %16 : vector<1x32xf32> to vector<128x32xf32>
    %26 = arith.addf %24, %25 : vector<128x32xf32>
    %cst_10 = arith.constant 0.000000e+00 : f32
    %27 = vector.broadcast %cst_10 : f32 to vector<128x32xf32>
    %28 = arith.maximumf %26, %27 : vector<128x32xf32>
    %c0_11 = arith.constant 0 : index
    %c0_12 = arith.constant 0 : index
    %29 = vector.load %arg5[%c0_11, %c0_12] : memref<32x32xf32, #tpu.memory_space<vmem>>, vector<32x32xf32>
    %cst_13 = arith.constant dense<0.000000e+00> : vector<128x32xf32>
    %30 = tpu.matmul %28, %29, %cst_13 {dimension_numbers = #tpu.dot_dimension_numbers<[1], [0], [0], [1], [0, 0, 1, 1], [], []>} : vector<128x32xf32>, vector<32x32xf32>, vector<128x32xf32> -> vector<128x32xf32>
    %31 = vector.broadcast %17 : vector<1x32xf32> to vector<128x32xf32>
    %32 = arith.addf %30, %31 : vector<128x32xf32>
    %cst_14 = arith.constant 0.000000e+00 : f32
    %33 = vector.broadcast %cst_14 : f32 to vector<128x32xf32>
    %34 = arith.maximumf %32, %33 : vector<128x32xf32>
    %c0_15 = arith.constant 0 : index
    %c0_16 = arith.constant 0 : index
    %35 = vector.load %arg6[%c0_15, %c0_16] : memref<32x64xf32, #tpu.memory_space<vmem>>, vector<32x64xf32>
    %cst_17 = arith.constant dense<0.000000e+00> : vector<128x64xf32>
    %36 = tpu.matmul %34, %35, %cst_17 {dimension_numbers = #tpu.dot_dimension_numbers<[1], [0], [0], [1], [0, 0, 1, 1], [], []>} : vector<128x32xf32>, vector<32x64xf32>, vector<128x64xf32> -> vector<128x64xf32>
    %37 = vector.broadcast %18 : vector<1x64xf32> to vector<128x64xf32>
    %38 = arith.addf %36, %37 : vector<128x64xf32>
    %cst_18 = arith.constant 0.000000e+00 : f32
    %39 = vector.broadcast %cst_18 : f32 to vector<128x64xf32>
    %40 = arith.maximumf %38, %39 : vector<128x64xf32>
    %c0_19 = arith.constant 0 : index
    %c0_20 = arith.constant 0 : index
    %41 = vector.load %arg7[%c0_19, %c0_20] : memref<2x64xf32, #tpu.memory_space<vmem>>, vector<2x64xf32>
    %cst_21 = arith.constant dense<0.000000e+00> : vector<2x128xf32>
    %42 = tpu.matmul %41, %40, %cst_21 {dimension_numbers = #tpu.dot_dimension_numbers<[1], [1], [0], [0], [0, 0, 1, 0], [], []>} : vector<2x64xf32>, vector<128x64xf32>, vector<2x128xf32> -> vector<2x128xf32>
    %c0_22 = arith.constant 0 : index
    %c0_23 = arith.constant 0 : index
    %43 = vector.load %arg9[%c0_22, %c0_23] : memref<2x1xf32, #tpu.memory_space<vmem>>, vector<2x1xf32>
    %44 = vector.broadcast %43 : vector<2x1xf32> to vector<2x128xf32>
    %45 = arith.addf %42, %44 : vector<2x128xf32>
    %cst_24 = arith.constant 0.000000e+00 : f32
    %46 = vector.broadcast %cst_24 : f32 to vector<2x128xf32>
    %47 = arith.subf %46, %45 : vector<2x128xf32>
    %48 = math.exp %47 : vector<2x128xf32>
    %cst_25 = arith.constant 1.000000e+00 : f32
    %49 = vector.broadcast %cst_25 : f32 to vector<2x128xf32>
    %50 = arith.addf %49, %48 : vector<2x128xf32>
    %cst_26 = arith.constant 1.000000e+00 : f32
    %51 = vector.broadcast %cst_26 : f32 to vector<2x128xf32>
    %52 = arith.divf %51, %50 : vector<2x128xf32>
    %c0_27 = arith.constant 0 : index
    %c0_28 = arith.constant 0 : index
    %53 = vector.load %arg10[%c0_27, %c0_28] : memref<2x128xf32, #tpu.memory_space<vmem>>, vector<2x128xf32>
    tpu.vector_store %arg10[%c0_27, %c0_28], %52 {strides = array<i32>} : memref<2x128xf32, #tpu.memory_space<vmem>>, vector<2x128xf32>,
    return
  }
  func.func @transform_0(%arg0: i32) -> (i32, i32) {
    %c0_i32 = arith.constant 0 : i32
    %c0_i32_0 = arith.constant 0 : i32
    return %arg0, %c0_i32 : i32, i32
  }
  func.func @transform_1(%arg0: i32) -> (i32, i32) {
    %c0_i32 = arith.constant 0 : i32
    %c0_i32_0 = arith.constant 0 : i32
    return %arg0, %c0_i32 : i32, i32
  }
  func.func @transform_2(%arg0: i32) -> (i32, i32) {
    %c0_i32 = arith.constant 0 : i32
    %c0_i32_0 = arith.constant 0 : i32
    %c0_i32_1 = arith.constant 0 : i32
    return %c0_i32, %c0_i32_0 : i32, i32
  }
  func.func @transform_3(%arg0: i32) -> (i32, i32) {
    %c0_i32 = arith.constant 0 : i32
    %c0_i32_0 = arith.constant 0 : i32
    %c0_i32_1 = arith.constant 0 : i32
    return %c0_i32, %c0_i32_0 : i32, i32
  }
  func.func @transform_4(%arg0: i32) -> (i32, i32) {
    %c0_i32 = arith.constant 0 : i32
    %c0_i32_0 = arith.constant 0 : i32
    %c0_i32_1 = arith.constant 0 : i32
    return %c0_i32, %c0_i32_0 : i32, i32
  }
  func.func @transform_5(%arg0: i32) -> (i32, i32) {
    %c0_i32 = arith.constant 0 : i32
    %c0_i32_0 = arith.constant 0 : i32
    %c0_i32_1 = arith.constant 0 : i32
    return %c0_i32, %c0_i32_0 : i32, i32
  }
  func.func @transform_6(%arg0: i32) -> (i32, i32) {
    %c0_i32 = arith.constant 0 : i32
    %c0_i32_0 = arith.constant 0 : i32
    %c0_i32_1 = arith.constant 0 : i32
    return %c0_i32, %c0_i32_0 : i32, i32
  }
  func.func @transform_7(%arg0: i32) -> (i32, i32) {
    %c0_i32 = arith.constant 0 : i32
    %c0_i32_0 = arith.constant 0 : i32
    %c0_i32_1 = arith.constant 0 : i32
    return %c0_i32, %c0_i32_0 : i32, i32
  }
  func.func @transform_8(%arg0: i32) -> (i32, i32) {
    %c0_i32 = arith.constant 0 : i32
    %c0_i32_0 = arith.constant 0 : i32
    %c0_i32_1 = arith.constant 0 : i32
    return %c0_i32, %c0_i32_0 : i32, i32
  }
  func.func @transform_9(%arg0: i32) -> (i32, i32) {
    %c0_i32 = arith.constant 0 : i32
    %c0_i32_0 = arith.constant 0 : i32
    return %c0_i32, %arg0 : i32, i32
  }
}

</mosaic_0001>

<bundles_post_ra>
// kernel: esmm_forward.1
= control target key start
LH: loop header
LB: loop body
LE: loop exit
PB: predicated region body
PF: predicated region fallthrough
CT: control target
= control target key end

     0   :  { %s2284_s30 = smov 0   ;;  %s2642_s0 = inlined_call_operand.vmem [shape: s32[256,3], index: 0, kind: input, shape index: {}]   ;;  %s2643_s1 = inlined_call_operand.vmem [shape: f32[256,8], index: 1, kind: input, shape index: {}]   ;;  %s2644_s2 = inlined_call_operand.vmem [shape: f32[45,32], index: 2, kind: input, shape index: {}]   ;;  %s2645_s3 = inlined_call_operand.vmem [shape: f32[8,32], index: 3, kind: input, shape index: {}]   ;;  %s2646_s4 = inlined_call_operand.vmem [shape: f32[32,32], index: 4, kind: input, shape index: {}]   ;;  %s2647_s5 = inlined_call_operand.vmem [shape: f32[32,64], index: 5, kind: input, shape index: {}]   ;;  %s2648_s6 = inlined_call_operand.vmem [shape: f32[2,64], index: 6, kind: input, shape index: {}]   ;;  %s2649_s7 = inlined_call_operand.vmem [shape: f32[1,128], index: 7, kind: input, shape index: {}]   ;;  %s2650_s8 = inlined_call_operand.vmem [shape: f32[2,1], index: 8, kind: input, shape index: {}]   ;;  %s2651_s9 = inlined_call_operand.vmem [shape: f32[2,256], index: 9, kind: output, shape index: {}]  }
   0x1 LB: > { %s2290_s10 = sadd.s32 4294967295, %s2223_s30   ;;  %p1721_p0 = scmp.ge.s32.totalorder %s2223_s30, 1  ;;  %s2223_s30 = sphi %s2284_s30, %s19_s30  }
   0x2   : > { %p299_p1 = scmp.lt.s32.totalorder %s2223_s30, 3 }
   0x4   : > { %p300_p2 = pnand %p1721_p0, %p299_p1 }
   0x5   : > { %s1722_s11 = sshll.u32 (!%p300_p2), %s2290_s10, 4  ;;  %v2225_v0 = vmov (!%p300_p2), 1   ;;  %v2226_v1 = vmov (!%p300_p2), 0   ;;  %v2227_v4 = vmov (!%p300_p2), 2   ;;  %v652_v6 = vld [vmem:[%s2645_s3] sm:$0xff] (!%p300_p2)  ;;  %v631_v8 = vld [vmem:[%s2644_s2 + $0x8] sm:$0xff] (!%p300_p2)  ;;  %v371_v47 = vlaneseq (!%p300_p2) }
   0x6   : > { %303 = sbr.rel (%p300_p2) target bundleno = 1199 (0x4af), region = 56  ;;  %2182 = vset.pattern.permute.xlu0 (!%p300_p2), %v2225_v0  ;;  %2183 = vset.pattern.permute.xlu1 (!%p300_p2), %v2226_v1  ;;  %p340_p3 = scmp.lt.s32.totalorder (!%p300_p2), %s1722_s11, 31  ;;  %v630_v7 = vld [vmem:[%s2644_s2] sm:$0xff] (!%p300_p2)  ;;  %vm653_vm0 = vcmask (!%p300_p2), 64512   ;;  %v632_v14 = vld [vmem:[%s2644_s2 + $0x10] sm:$0xff] (!%p300_p2)  ;;  %v633_v15 = vld [vmem:[%s2644_s2 + $0x18] sm:$0xff] (!%p300_p2) }
   0x7   : > { %v2085_v10 = vpack.c.bf16 (!%p300_p2), %v631_v8, %v630_v7  ;;  %1924 = vmatprep.subr.mxu0 (!%p300_p2), %v652_v6  ;;  %v2089_v17 = vpack.c.bf16 (!%p300_p2), %v633_v15, %v632_v14  ;;  %v634_v19 = vld [vmem:[%s2644_s2 + $0x20] sm:$0xff] (!%p300_p2)  ;;  %v635_v20 = vld [vmem:[%s2644_s2 + $0x28] sm:$0x1f] (!%p300_p2)  ;;  %2147 = vmatprep.subr.mxu1 (!%p300_p2), %v652_v6  ;;  %vm896_vm1 = vcmask (!%p300_p2), 1044480   ;;  %vm2228_vm2 = vmmov (!%p300_p2), 1   ;;  %s2230_s24 = smov (!%p300_p2), 96  }
   0x8   : > { %1925 = vmatpush3.msra.mxu0 (!%p300_p2), %v652_v6  ;;  %v2093_v22 = vpack.c.bf16 (!%p300_p2), %v635_v20, %v634_v19  ;;  %vm2094_vm3 = vmpackc.low (!%p300_p2), %vm896_vm1, %vm2228_vm2  ;;  %2148 = vmatpush3.msra.mxu1 (!%p300_p2), %v652_v6  ;;  %v2400_v50 = vand.u32 (!%p300_p2), 127, %v371_v47  ;;  %vm847_vm13 = vcmask (!%p300_p2), 367616   ;;  %v1083_v57 = vld [vmem:[%s2646_s4] sm:$0xff] (!%p300_p2)  ;;  %v1084_v58 = vld [vmem:[%s2646_s4 + $0x8] sm:$0xff] (!%p300_p2)  ;;  %v2229_v60 = vmov (!%p300_p2), 0.0   ;;  %s2231_s14 = smov (!%p300_p2), 64  }
   0x9   : > { %2086 = vmatprep.subr.bf16.mxu0 (!%p300_p2), %v2085_v10  ;;  %v2099_v59 = vpack.c.bf16 (!%p300_p2), %v1084_v58, %v1083_v57  ;;  %p351_p4 = scmp.lt.s32.totalorder (!%p300_p2), %s2290_s10, 1 }
   0xb   : > { %2100 = vmatprep.subr.bf16.mxu1 (!%p300_p2), %v2099_v59 }
   0xd   : > { %s2655_s11 = smov (!%p340_p3, %s1722_s11), 31  ;;  %s2657_s10 = smov (!%p351_p4, %s2290_s10), 1 }
   0xe   : > { %s1723_s12 = sshll.u32 %s2655_s11, 3  ;;  %s1726_s19 = sshll.u32 %s2657_s10, 1 }
   0xf   : > { %s2300_s15 = scalar_lea.vmem %s2642_s0, %s1723_s12  ;;  %s2313_s20 = scalar_lea.vmem %s2643_s1, %s1723_s12 }
  0x10   : > { %v356_v2 = vld [vmem:[%s2300_s15 + $0x8] sm:$0xff]  ;;  %v355_v3 = vld [vmem:[%s2300_s15] sm:$0xff]  ;;  %v358_v5 = vld [vmem:[%s2300_s15 + $0x18] sm:$0xff]  ;;  %s354_s22 = scalar_lea.vmem %s2651_s9, %s1726_s19 }
  0x11   : > { %377 = vperm.xlu1 %2183, %v356_v2   ;;  %438 = vperm.xlu0 %2182, %v355_v3   ;;  %v636_v9 = vld [vmem:[%s2313_s20] sm:$0xff]  ;;  %v360_v11 = vld [vmem:[%s2300_s15 + $0x28] sm:$0xff]  ;;  %v357_v13 = vld [vmem:[%s2300_s15 + $0x10] sm:$0xff] }
  0x12   : > { %v637_v12 = vld [vmem:[%s2313_s20 + $0x8] sm:$0xff]  ;;  %1926 = vmatprep.mubr.msk.f32.mxu0 %vm653_vm0, %v636_v9  ;;  %v638_v16 = vld [vmem:[%s2313_s20 + $0x10] sm:$0xff]  ;;  %v639_v18 = vld [vmem:[%s2313_s20 + $0x18] sm:$0xff] }
  0x13   : > { %1927 = vmatmul.mubr.msk.f32.vlgmr.msra.gmra.mrb[0].mxu0 %vm653_vm0, %v637_v12  ;;  %v640_v21 = vld [vmem:[%s2313_s20 + $0x20] sm:$0xff]  ;;  %v641_v23 = vld [vmem:[%s2313_s20 + $0x28] sm:$0xff]  ;;  %v362_v24 = vld [vmem:[%s2300_s15 + $0x38] sm:$0xff] }
  0x14   : > { %2088 = vmatpush3.bf16.msra.mxu0 %v2085_v10  ;;  %1929 = vmatprep.mubr.msk.f32.mxu0 %vm653_vm0, %v638_v16  ;;  %v359_v25 = vld [vmem:[%s2300_s15 + $0x20] sm:$0xff]  ;;  %v364_v26 = vld [vmem:[%s2300_s15 + $0x48] sm:$0xff]  ;;  %v366_v27 = vld [vmem:[%s2300_s15 + $0x58] sm:$0xff] }
  0x15   : > { %2184 = vset.pattern.permute.xlu1 %v2225_v0  ;;  %2186 = vset.pattern.permute.xlu0 %v2227_v4  ;;  %v361_v28 = vld [vmem:[%s2300_s15 + $0x30] sm:$0xff]  ;;  %v368_v29 = vld [vmem:[%s2300_s15 + $0x68] sm:$0xff]  ;;  %v370_v30 = vld [vmem:[%s2300_s15 + $0x78] sm:$0xff] }
  0x16   : > { %441 = vperm.xlu1 %2184, %v356_v2   ;;  %521 = vperm.xlu0 %2186, %v356_v2   ;;  %v363_v31 = vld [vmem:[%s2300_s15 + $0x40] sm:$0xff]  ;;  %v642_v32 = vld [vmem:[%s2313_s20 + $0x30] sm:$0xff]  ;;  %v643_v33 = vld [vmem:[%s2313_s20 + $0x38] sm:$0xff] }
  0x17   : > { %2090 = vmatprep.subr.bf16.mxu0 %v2089_v17  ;;  %1930 = vmatmul.mubr.msk.f32.gmra.mrb[2].mxu0 %vm653_vm0, %v639_v18  ;;  %v365_v34 = vld [vmem:[%s2300_s15 + $0x50] sm:$0xff]  ;;  %v644_v35 = vld [vmem:[%s2313_s20 + $0x40] sm:$0xff]  ;;  %v645_v36 = vld [vmem:[%s2313_s20 + $0x48] sm:$0xff] }
  0x18   : > { %2092 = vmatpush3.bf16.msra.mxu0 %v2089_v17  ;;  %1932 = vmatprep.mubr.msk.f32.mxu0 %vm653_vm0, %v640_v21  ;;  %v367_v37 = vld [vmem:[%s2300_s15 + $0x60] sm:$0xff]  ;;  %v646_v38 = vld [vmem:[%s2313_s20 + $0x50] sm:$0xff]  ;;  %v647_v39 = vld [vmem:[%s2313_s20 + $0x58] sm:$0xff] }
  0x19   : > { %2095 = vmatprep.subr.msk.bf16.mxu0 %vm2094_vm3, %v2093_v22  ;;  %1935 = vmatprep.mubr.msk.f32.mxu1 %vm653_vm0, %v642_v32  ;;  %v369_v40 = vld [vmem:[%s2300_s15 + $0x70] sm:$0xff]  ;;  %v648_v41 = vld [vmem:[%s2313_s20 + $0x60] sm:$0xff]  ;;  %v649_v44 = vld [vmem:[%s2313_s20 + $0x68] sm:$0xff] }
  0x1a   : > { %2185 = vset.pattern.permute.xlu1 %v2227_v4  ;;  %527 = vperm.xlu0 %2186, %v358_v5   ;;  %v650_v53 = vld [vmem:[%s2313_s20 + $0x70] sm:$0xff]  ;;  %v651_v55 = vld [vmem:[%s2313_s20 + $0x78] sm:$0xff] }
  0x1b   : > { %518 = vperm.xlu1 %2185, %v355_v3   ;;  %1933 = vmatmul.mubr.msk.f32.gmra.mrb[4].mxu0 %vm653_vm0, %v641_v23 }
  0x1c   : > { %2098 = vmatpush3.bf16.msk.msra.mxu0 %vm2094_vm3, %v2093_v22  ;;  %1936 = vmatmul.mubr.msk.f32.vlgmr.msra.gmra.mrb[0].mxu1 %vm653_vm0, %v643_v33  ;;  %v1085_v33 = vld [vmem:[%s2646_s4 + $0x10] sm:$0xff] }
  0x1d   : > { %1938 = vmatprep.mubr.msk.f32.mxu1 %vm653_vm0, %v644_v35  ;;  %2102 = vmatpush3.bf16.msra.mxu1 %v2099_v59 }
  0x1e   : > { %533 = vperm.xlu0 %2186, %v360_v11  }
  0x1f   : > { %2187 = vset.pattern.permute.xlu1 %v2226_v1 }
  0x20   : > { %380 = vperm.xlu1 %2187, %v357_v13   ;;  %1939 = vmatmul.mubr.msk.f32.gmra.mrb[2].mxu1 %vm653_vm0, %v645_v36 }
  0x21   : > { %1941 = vmatprep.mubr.msk.f32.mxu1 %vm653_vm0, %v646_v38 }
  0x22   : > { %2193 = vset.pattern.permute.xlu0 %v2226_v1 }
  0x23   : > { %374 = vperm.xlu0 %2193, %v355_v3  }
  0x24   : > { %2188 = vset.pattern.permute.xlu1 %v2225_v0  ;;  %1942 = vmatmul.mubr.msk.f32.gmra.mrb[4].mxu1 %vm653_vm0, %v647_v39 }
  0x25   : > { %444 = vperm.xlu1 %2188, %v357_v13   ;;  %1944 = vmatprep.mubr.msk.f32.mxu1 %vm653_vm0, %v648_v41 }
  0x27   : > { %383 = vperm.xlu0 %2193, %v358_v5  }
  0x28   : > { %1945 = vmatmul.mubr.msk.f32.gmra.mrb[6].mxu1 %vm653_vm0, %v649_v44 }
  0x29   : > { %447 = vperm.xlu1 %2188, %v358_v5   ;;  %1947 = vmatprep.mubr.msk.f32.mxu1 %vm653_vm0, %v650_v53 }
  0x2b   : > { %389 = vperm.xlu0 %2193, %v360_v11  }
  0x2c   : > { %1948 = vmatmul.mubr.msk.f32.gmra.mrb[8].mxu1 %vm653_vm0, %v651_v55 }
  0x2d   : > { %2189 = vset.pattern.permute.xlu1 %v2227_v4 }
  0x2e   : > { %524 = vperm.xlu1 %2189, %v357_v13  }
  0x2f   : > { %395 = vperm.xlu0 %2193, %v362_v24  }
  0x32   : > { %2190 = vset.pattern.permute.xlu1 %v2226_v1 }
  0x33   : > { %386 = vperm.xlu1 %2190, %v359_v25   ;;  %401 = vperm.xlu0 %2193, %v364_v26  }
  0x37   : > { %2191 = vset.pattern.permute.xlu1 %v2225_v0  ;;  %407 = vperm.xlu0 %2193, %v366_v27  }
  0x38   : > { %450 = vperm.xlu1 %2191, %v359_v25  }
  0x3b   : > { %2202 = vset.pattern.permute.xlu0 %v2227_v4 }
  0x3c   : > { %453 = vperm.xlu1 %2191, %v360_v11   ;;  %539 = vperm.xlu0 %2202, %v362_v24  }
  0x40   : > { %2192 = vset.pattern.permute.xlu1 %v2227_v4  ;;  %545 = vperm.xlu0 %2202, %v364_v26  }
  0x41   : > { %530 = vperm.xlu1 %2192, %v359_v25  }
  0x44   : > { %551 = vperm.xlu0 %2202, %v366_v27  }
  0x45   : > { %2194 = vset.pattern.permute.xlu1 %v2226_v1 }
  0x46   : > { %392 = vperm.xlu1 %2194, %v361_v28  }
  0x48   : > { %557 = vperm.xlu0 %2202, %v368_v29  }
  0x4a   : > { %2195 = vset.pattern.permute.xlu1 %v2225_v0 }
  0x4b   : > { %456 = vperm.xlu1 %2195, %v361_v28  }
  0x4c   : > { %2207 = vset.pattern.permute.xlu0 %v2226_v1 }
  0x4d   : > { %413 = vperm.xlu0 %2207, %v368_v29  }
  0x4f   : > { %459 = vperm.xlu1 %2195, %v362_v24  }
  0x51   : > { %419 = vperm.xlu0 %2207, %v370_v30  }
  0x53   : > { %2196 = vset.pattern.permute.xlu1 %v2227_v4 }
  0x54   : > { %536 = vperm.xlu1 %2196, %v361_v28  }
  0x55   : > { %2211 = vset.pattern.permute.xlu0 %v2227_v4 }
  0x56   : > { %563 = vperm.xlu0 %2211, %v370_v30  }
  0x58   : > { %2197 = vset.pattern.permute.xlu1 %v2226_v1 }
  0x59   : > { %398 = vperm.xlu1 %2197, %v363_v31  }
  0x5a   : > { %2212 = vset.pattern.permute.xlu0 %v2226_v1 }
  0x5d   : > { %2198 = vset.pattern.permute.xlu1 %v2225_v0 }
  0x5e   : > { %462 = vperm.xlu1 %2198, %v363_v31  }
  0x62   : > { %465 = vperm.xlu1 %2198, %v364_v26  }
  0x66   : > { %2199 = vset.pattern.permute.xlu1 %v2227_v4 }
  0x67   : > { %542 = vperm.xlu1 %2199, %v363_v31  }
  0x6b   : > { %2200 = vset.pattern.permute.xlu1 %v2226_v1 }
  0x6c   : > { %404 = vperm.xlu1 %2200, %v365_v34  }
  0x70   : > { %2201 = vset.pattern.permute.xlu1 %v2225_v0 }
  0x71   : > { %468 = vperm.xlu1 %2201, %v365_v34  }
  0x75   : > { %471 = vperm.xlu1 %2201, %v366_v27  }
  0x79   : > { %2203 = vset.pattern.permute.xlu1 %v2227_v4 }
  0x7a   : > { %548 = vperm.xlu1 %2203, %v365_v34   ;;  %v1086_v34 = vld [vmem:[%s2646_s4 + $0x18] sm:$0xff] }
  0x7b   : > { %v2103_v36 = vpack.c.bf16 %v1086_v34, %v1085_v33 }
  0x7d   : > { %2104 = vmatprep.subr.bf16.mxu1 %v2103_v36 }
  0x7e   : > { %2204 = vset.pattern.permute.xlu1 %v2226_v1  ;;  %2106 = vmatpush3.bf16.msra.mxu1 %v2103_v36 }
  0x7f   : > { %410 = vperm.xlu1 %2204, %v367_v37  }
  0x83   : > { %2205 = vset.pattern.permute.xlu1 %v2225_v0 }
  0x84   : > { %474 = vperm.xlu1 %2205, %v367_v37  }
  0x88   : > { %477 = vperm.xlu1 %2205, %v368_v29  }
  0x8c   : > { %2206 = vset.pattern.permute.xlu1 %v2227_v4 }
  0x8d   : > { %554 = vperm.xlu1 %2206, %v367_v37  }
  0x90   : > { %v378_v42 = vpop.permute.xlu1 %377  ;;  %v439_v43 = vpop.permute.xlu0 %438 }
  0x91   : > { %2208 = vset.pattern.permute.xlu1 %v2226_v1  ;;  %vm422_vm5 = vcmp.eq.s32.totalorder %v2400_v50, %v378_v42  ;;  %vm485_vm8 = vcmp.eq.s32.totalorder %v2400_v50, %v439_v43 }
  0x92   : > { %416 = vperm.xlu1 %2208, %v369_v40  }
  0x95   : > { %v442_v45 = vpop.permute.xlu1 %441  ;;  %v522_v46 = vpop.permute.xlu0 %521 }
  0x96   : > { %2209 = vset.pattern.permute.xlu1 %v2225_v0  ;;  %vm486_vm4 = vcmp.eq.s32.totalorder %v2400_v50, %v442_v45  ;;  %vm566_vm7 = vcmp.eq.s32.totalorder %v2400_v50, %v522_v46 }
  0x97   : > { %480 = vperm.xlu1 %2209, %v369_v40   ;;  %vm502_vm6 = vmor %vm422_vm5, %vm486_vm4 }
  0x98   : > { %vm582_vm9 = vmor %vm502_vm6, %vm566_vm7 }
  0x99   : > { %v528_v48 = vpop.permute.xlu0 %527  ;;  %v1728_v63 = vsel %vm582_vm9, 1.0, %v2229_v60 }
  0x9a   : > { %v519_v49 = vpop.permute.xlu1 %518  ;;  %vm568_vm2 = vcmp.eq.s32.totalorder %v2400_v50, %v528_v48 }
  0x9b   : > { %483 = vperm.xlu1 %2209, %v370_v30   ;;  %vm565_vm11 = vcmp.eq.s32.totalorder %v2400_v50, %v519_v49 }
  0x9d   : > { %v534_v51 = vpop.permute.xlu0 %533 }
  0x9f   : > { %2210 = vset.pattern.permute.xlu1 %v2227_v4  ;;  %v381_v52 = vpop.permute.xlu1 %380 }
  0xa0   : > { %560 = vperm.xlu1 %2210, %v369_v40   ;;  %vm423_vm4 = vcmp.eq.s32.totalorder %v2400_v50, %v381_v52 }
  0xa2   : > { %v375_v54 = vpop.permute.xlu0 %374 }
  0xa3   : > { %vm421_vm10 = vcmp.eq.s32.totalorder %v2400_v50, %v375_v54 }
  0xa4   : > { %vm501_vm12 = vmor %vm421_vm10, %vm485_vm8  ;;  %v445_v56 = vpop.permute.xlu1 %444 }
  0xa5   : > { %vm581_vm14 = vmor %vm501_vm12, %vm565_vm11  ;;  %vm487_vm1 = vcmp.eq.s32.totalorder %v2400_v50, %v445_v56  ;;  %vm570_vm12 = vcmp.eq.s32.totalorder %v2400_v50, %v534_v51 }
  0xa6   : > { %v1727_v61 = vsel %vm581_vm14, 1.0, %v2229_v60  ;;  %v384_v62 = vpop.permute.xlu0 %383  ;;  %vm503_vm5 = vmor %vm423_vm4, %vm487_vm1 }
  0xa7   : > { %1962 = vmatprep.mubr.msk.f32.mxu0 %vm847_vm13, %v1727_v61  ;;  %vm424_vm15 = vcmp.eq.s32.totalorder %v2400_v50, %v384_v62  ;;  %v2502_v62 = vld [vmem:[%s2649_s7] ss:$0 sm:$0xff] }
  0xa8   : > { %v448_v0 = vpop.permute.xlu1 %447  ;;  %1963 = vmatmul.mubr.msk.f32.vlgmr.msra.gmra.mrb[0].mxu0 %vm847_vm13, %v1728_v63  ;;  %1087 = vrot.lane.b32.xlu1 %v2502_v62, %s2230_s24 }
  0xa9   : > { %vm488_vm0 = vcmp.eq.s32.totalorder %v2400_v50, %v448_v0 }
  0xaa   : > { %vm504_vm3 = vmor %vm424_vm15, %vm488_vm0  ;;  %v390_v6 = vpop.permute.xlu0 %389 }
  0xab   : > { %vm584_vm6 = vmor %vm504_vm3, %vm568_vm2  ;;  %vm426_vm9 = vcmp.eq.s32.totalorder %v2400_v50, %v390_v6 }
  0xac   : > { %v1730_v3 = vsel %vm584_vm6, 1.0, %v2229_v60  ;;  %1304 = vrot.lane.b32.xlu1 %v2502_v62, %s2231_s14 }
  0xad   : > { %v525_v1 = vpop.permute.xlu1 %524 }
  0xae   : > { %vm567_vm7 = vcmp.eq.s32.totalorder %v2400_v50, %v525_v1  ;;  %v396_v8 = vpop.permute.xlu0 %395 }
  0xaf   : > { %vm583_vm8 = vmor %vm503_vm5, %vm567_vm7  ;;  %vm428_vm4 = vcmp.eq.s32.totalorder %v2400_v50, %v396_v8  ;;  %v1300_v8 = vld [vmem:[%s2647_s5] sm:$0xff] }
  0xb0   : > { %v1729_v2 = vsel %vm583_vm8, 1.0, %v2229_v60 }
  0xb1   : > { %1965 = vmatprep.mubr.msk.f32.mxu0 %vm847_vm13, %v1729_v2 }
  0xb2   : > { %v387_v4 = vpop.permute.xlu1 %386  ;;  %1966 = vmatmul.mubr.msk.f32.gmra.mrb[2].mxu0 %vm847_vm13, %v1730_v3  ;;  %v402_v10 = vpop.permute.xlu0 %401 }
  0xb3   : > { %vm425_vm15 = vcmp.eq.s32.totalorder %v2400_v50, %v387_v4 }
  0xb6   : > { %v408_v14 = vpop.permute.xlu0 %407 }
  0xb7   : > { %v451_v5 = vpop.permute.xlu1 %450 }
  0xb8   : > { %vm489_vm11 = vcmp.eq.s32.totalorder %v2400_v50, %v451_v5 }
  0xb9   : > { %vm505_vm0 = vmor %vm425_vm15, %vm489_vm11  ;;  %vm430_vm15 = vcmp.eq.s32.totalorder %v2400_v50, %v402_v10 }
  0xbb   : > { %v454_v7 = vpop.permute.xlu1 %453  ;;  %v540_v17 = vpop.permute.xlu0 %539 }
  0xbc   : > { %vm490_vm10 = vcmp.eq.s32.totalorder %v2400_v50, %v454_v7  ;;  %vm572_vm8 = vcmp.eq.s32.totalorder %v2400_v50, %v540_v17 }
  0xbd   : > { %vm506_vm14 = vmor %vm426_vm9, %vm490_vm10 }
  0xbe   : > { %vm586_vm1 = vmor %vm506_vm14, %vm570_vm12 }
  0xbf   : > { %v1732_v12 = vsel %vm586_vm1, 1.0, %v2229_v60  ;;  %v546_v24 = vpop.permute.xlu0 %545 }
  0xc0   : > { %v531_v9 = vpop.permute.xlu1 %530 }
  0xc1   : > { %vm569_vm2 = vcmp.eq.s32.totalorder %v2400_v50, %v531_v9  ;;  %v1301_v9 = vld [vmem:[%s2647_s5 + $0x8] sm:$0xff] }
  0xc2   : > { %vm585_vm3 = vmor %vm505_vm0, %vm569_vm2  ;;  %v2107_v10 = vpack.c.bf16 %v1301_v9, %v1300_v8 }
  0xc3   : > { %v1731_v11 = vsel %vm585_vm3, 1.0, %v2229_v60  ;;  %vm574_vm3 = vcmp.eq.s32.totalorder %v2400_v50, %v546_v24  ;;  %v552_v31 = vpop.permute.xlu0 %551 }
  0xc4   : > { %1968 = vmatprep.mubr.msk.f32.mxu0 %vm847_vm13, %v1731_v11  ;;  %2108 = vmatprep.subr.bf16.mxu1 %v2107_v10 }
  0xc5   : > { %v393_v13 = vpop.permute.xlu1 %392  ;;  %1969 = vmatmul.mubr.msk.f32.gmra.mrb[4].mxu0 %vm847_vm13, %v1732_v12 }
  0xc6   : > { %vm427_vm9 = vcmp.eq.s32.totalorder %v2400_v50, %v393_v13 }
  0xc7   : > { %v558_v39 = vpop.permute.xlu0 %557 }
  0xca   : > { %v457_v15 = vpop.permute.xlu1 %456 }
  0xcb   : > { %vm491_vm6 = vcmp.eq.s32.totalorder %v2400_v50, %v457_v15 }
  0xcc   : > { %vm507_vm10 = vmor %vm427_vm9, %vm491_vm6  ;;  %v414_v41 = vpop.permute.xlu0 %413 }
  0xce   : > { %v460_v16 = vpop.permute.xlu1 %459 }
  0xcf   : > { %vm492_vm5 = vcmp.eq.s32.totalorder %v2400_v50, %v460_v16 }
  0xd0   : > { %vm508_vm7 = vmor %vm428_vm4, %vm492_vm5  ;;  %v420_v47 = vpop.permute.xlu0 %419 }
  0xd1   : > { %vm588_vm11 = vmor %vm508_vm7, %vm572_vm8 }
  0xd2   : > { %v1734_v20 = vsel %vm588_vm11, 1.0, %v2229_v60 }
  0xd3   : > { %v537_v18 = vpop.permute.xlu1 %536 }
  0xd4   : > { %vm571_vm12 = vcmp.eq.s32.totalorder %v2400_v50, %v537_v18 }
  0xd5   : > { %vm587_vm14 = vmor %vm507_vm10, %vm571_vm12  ;;  %vm432_vm10 = vcmp.eq.s32.totalorder %v2400_v50, %v408_v14  ;;  %v564_v51 = vpop.permute.xlu0 %563 }
  0xd6   : > { %v1733_v19 = vsel %vm587_vm14, 1.0, %v2229_v60  ;;  %vm576_vm14 = vcmp.eq.s32.totalorder %v2400_v50, %v552_v31 }
  0xd7   : > { %1971 = vmatprep.mubr.msk.f32.mxu0 %vm847_vm13, %v1733_v19 }
  0xd8   : > { %v399_v21 = vpop.permute.xlu1 %398  ;;  %1972 = vmatmul.mubr.msk.f32.gmra.mrb[6].mxu0 %vm847_vm13, %v1734_v20 }
  0xd9   : > { %vm429_vm4 = vcmp.eq.s32.totalorder %v2400_v50, %v399_v21 }
  0xdd   : > { %v463_v22 = vpop.permute.xlu1 %462 }
  0xde   : > { %vm493_vm1 = vcmp.eq.s32.totalorder %v2400_v50, %v463_v22 }
  0xdf   : > { %vm509_vm5 = vmor %vm429_vm4, %vm493_vm1  ;;  %vm434_vm4 = vcmp.eq.s32.totalorder %v2400_v50, %v414_v41 }
  0xe1   : > { %v466_v23 = vpop.permute.xlu1 %465 }
  0xe2   : > { %vm494_vm0 = vcmp.eq.s32.totalorder %v2400_v50, %v466_v23 }
  0xe3   : > { %vm510_vm2 = vmor %vm430_vm15, %vm494_vm0 }
  0xe4   : > { %vm590_vm6 = vmor %vm510_vm2, %vm574_vm3 }
  0xe5   : > { %v1736_v27 = vsel %vm590_vm6, 1.0, %v2229_v60 }
  0xe6   : > { %v543_v25 = vpop.permute.xlu1 %542 }
  0xe7   : > { %vm573_vm7 = vcmp.eq.s32.totalorder %v2400_v50, %v543_v25 }
  0xe8   : > { %vm589_vm8 = vmor %vm509_vm5, %vm573_vm7 }
  0xe9   : > { %v1735_v26 = vsel %vm589_vm8, 1.0, %v2229_v60 }
  0xea   : > { %1974 = vmatprep.mubr.msk.f32.mxu0 %vm847_vm13, %v1735_v26 }
  0xeb   : > { %v405_v28 = vpop.permute.xlu1 %404  ;;  %1975 = vmatmul.mubr.msk.f32.gmra.mrb[8].mxu0 %vm847_vm13, %v1736_v27 }
  0xec   : > { %vm431_vm15 = vcmp.eq.s32.totalorder %v2400_v50, %v405_v28 }
  0xef   : > { %v1937_v55 = vpop.f32.mrb[0].mxu1 }
  0xf0   : > { %v469_v29 = vpop.permute.xlu1 %468  ;;  %v798_v56 = vpop.f32.mrb[1].mxu1 }
  0xf1   : > { %vm495_vm11 = vcmp.eq.s32.totalorder %v2400_v50, %v469_v29 }
  0xf2   : > { %vm511_vm0 = vmor %vm431_vm15, %vm495_vm11 }
  0xf3   : > { %v1940_v57 = vpop.f32.mrb[2].mxu1 }
  0xf4   : > { %v472_v30 = vpop.permute.xlu1 %471  ;;  %v808_v58 = vpop.f32.mrb[3].mxu1 }
  0xf5   : > { %vm496_vm9 = vcmp.eq.s32.totalorder %v2400_v50, %v472_v30 }
  0xf6   : > { %vm512_vm12 = vmor %vm432_vm10, %vm496_vm9  ;;  %vm578_vm9 = vcmp.eq.s32.totalorder %v2400_v50, %v558_v39 }
  0xf7   : > { %vm592_vm1 = vmor %vm512_vm12, %vm576_vm14  ;;  %v1943_v59 = vpop.f32.mrb[4].mxu1 }
  0xf8   : > { %v1738_v37 = vsel %vm592_vm1, 1.0, %v2229_v60  ;;  %vm436_vm1 = vcmp.eq.s32.totalorder %v2400_v50, %v420_v47  ;;  %v818_v61 = vpop.f32.mrb[5].mxu1 }
  0xf9   : > { %v549_v32 = vpop.permute.xlu1 %548 }
  0xfa   : > { %vm575_vm2 = vcmp.eq.s32.totalorder %v2400_v50, %v549_v32 }
  0xfb   : > { %vm591_vm3 = vmor %vm511_vm0, %vm575_vm2 }
  0xfc   : > { %v1737_v35 = vsel %vm591_vm3, 1.0, %v2229_v60  ;;  %vm580_vm3 = vcmp.eq.s32.totalorder %v2400_v50, %v564_v51 }
  0xfd   : > { %1977 = vmatprep.mubr.msk.f32.mxu0 %vm847_vm13, %v1737_v35 }
  0xfe   : > { %v411_v38 = vpop.permute.xlu1 %410  ;;  %1978 = vmatmul.mubr.msk.f32.gmra.mrb[10].mxu0 %vm847_vm13, %v1738_v37 }
  0xff   : > { %vm433_vm8 = vcmp.eq.s32.totalorder %v2400_v50, %v411_v38 }
 0x103   : > { %v475_v40 = vpop.permute.xlu1 %474 }
 0x104   : > { %vm497_vm6 = vcmp.eq.s32.totalorder %v2400_v50, %v475_v40 }
 0x105   : > { %vm513_vm10 = vmor %vm433_vm8, %vm497_vm6 }
 0x107   : > { %v478_v42 = vpop.permute.xlu1 %477 }
 0x108   : > { %vm498_vm5 = vcmp.eq.s32.totalorder %v2400_v50, %v478_v42 }
 0x109   : > { %vm514_vm7 = vmor %vm434_vm4, %vm498_vm5 }
 0x10a   : > { %vm594_vm11 = vmor %vm514_vm7, %vm578_vm9  ;;  %vm1523_vm9 = vcmask 523264  }
 0x10b   : > { %v1740_v45 = vsel %vm594_vm11, 1.0, %v2229_v60  ;;  %vm2233_vm11 = vmmov 0  }
 0x10c   : > { %v555_v43 = vpop.permute.xlu1 %554 }
 0x10d   : > { %vm577_vm12 = vcmp.eq.s32.totalorder %v2400_v50, %v555_v43 }
 0x10e   : > { %vm593_vm14 = vmor %vm513_vm10, %vm577_vm12 }
 0x10f   : > { %v1739_v44 = vsel %vm593_vm14, 1.0, %v2229_v60  ;;  %vm2585_vm10 = vmpackc.low %vm1523_vm9, %vm1523_vm9 }
 0x110   : > { %1980 = vmatprep.mubr.msk.f32.mxu0 %vm847_vm13, %v1739_v44 }
 0x111   : > { %v417_v46 = vpop.permute.xlu1 %416  ;;  %1981 = vmatmul.mubr.msk.f32.gmra.mrb[12].mxu0 %vm847_vm13, %v1740_v45  ;;  %v1302_v45 = vld [vmem:[%s2647_s5 + $0x10] sm:$0xff] }
 0x112   : > { %vm435_vm4 = vcmp.eq.s32.totalorder %v2400_v50, %v417_v46  ;;  %v1303_v46 = vld [vmem:[%s2647_s5 + $0x18] sm:$0xff] }
 0x113   : > { %v2111_v47 = vpack.c.bf16 %v1303_v46, %v1302_v45 }
 0x116   : > { %v481_v48 = vpop.permute.xlu1 %480 }
 0x117   : > { %vm499_vm0 = vcmp.eq.s32.totalorder %v2400_v50, %v481_v48 }
 0x118   : > { %vm515_vm5 = vmor %vm435_vm4, %vm499_vm0 }
 0x11a   : > { %v484_v49 = vpop.permute.xlu1 %483 }
 0x11b   : > { %vm500_vm15 = vcmp.eq.s32.totalorder %v2400_v50, %v484_v49 }
 0x11c   : > { %vm516_vm2 = vmor %vm436_vm1, %vm500_vm15 }
 0x11d   : > { %vm596_vm6 = vmor %vm516_vm2, %vm580_vm3 }
 0x11e   : > { %v1742_v54 = vsel %vm596_vm6, 1.0, %v2229_v60 }
 0x11f   : > { %v561_v52 = vpop.permute.xlu1 %560 }
 0x120   : > { %vm579_vm7 = vcmp.eq.s32.totalorder %v2400_v50, %v561_v52  ;;  %v2505_v50 = vpop.f32.mrb[6].mxu1 }
 0x121   : > { %vm595_vm8 = vmor %vm515_vm5, %vm579_vm7  ;;  %v2507_v63 = vpop.f32.mrb[7].mxu1 }
 0x122   : > { %v1741_v53 = vsel %vm595_vm8, 1.0, %v2229_v60  ;;  %v2509_v0 = vpop.f32.mrb[8].mxu1 }
 0x123   : > { %1983 = vmatprep.mubr.msk.f32.mxu0 %vm847_vm13, %v1741_v53  ;;  %v2511_v1 = vpop.f32.mrb[9].mxu1 }
 0x124   : > { %1984 = vmatmul.mubr.msk.f32.gmra.mrb[14].mxu0 %vm847_vm13, %v1742_v54  ;;  %vm1090_vm13 = vcmask 261120  }
 0x125   : > { %2082 = vmatprep.mubr.msk.f32.mxu0 %vm2233_vm11, %v2229_v60 }
 0x17b   : > { %v1964_v2 = vpop.f32.mrb[0].mxu0 }
 0x17c   : > { %v1052_v3 = vadd.f32 %v1964_v2, %v2502_v62  ;;  %v966_v4 = vpop.f32.mrb[1].mxu0 }
 0x17d   : > { %v1051_v5 = vadd.f32 %v2502_v62, %v966_v4 }
 0x17e   : > { %v1068_v7 = vmax.f32 %v1052_v3, 0.0 }
 0x17f   : > { %v1067_v6 = vmax.f32 %v1051_v5, 0.0 }
 0x181   : > { %1994 = vmatprep.mubr.msk.f32.mxu1 %vm1090_vm13, %v1067_v6  ;;  %v1088_v6 = vpop.permute.xlu1 %1087 }
 0x182   : > { %1995 = vmatmul.mubr.msk.f32.vlgmr.msra.gmra.mrb[10].mxu1 %vm1090_vm13, %v1068_v7 }
 0x183   : > { %2110 = vmatpush3.bf16.msra.mxu1 %v2107_v10 }
 0x184   : > { %2112 = vmatprep.subr.bf16.mxu1 %v2111_v47 }
 0x185   : > { %v1967_v11 = vpop.f32.mrb[2].mxu0 }
 0x186   : > { %v1054_v12 = vadd.f32 %v1967_v11, %v2502_v62  ;;  %v976_v13 = vpop.f32.mrb[3].mxu0 }
 0x187   : > { %v1053_v14 = vadd.f32 %v2502_v62, %v976_v13  ;;  %2114 = vmatpush3.bf16.msra.mxu1 %v2111_v47 }
 0x188   : > { %v1070_v16 = vmax.f32 %v1054_v12, 0.0 }
 0x189   : > { %v1069_v15 = vmax.f32 %v1053_v14, 0.0 }
 0x18b   : > { %1997 = vmatprep.mubr.msk.f32.mxu1 %vm1090_vm13, %v1069_v15 }
 0x18c   : > { %1998 = vmatmul.mubr.msk.f32.gmra.mrb[12].mxu1 %vm1090_vm13, %v1070_v16 }
 0x198   : > { %v1970_v17 = vpop.f32.mrb[4].mxu0 }
 0x199   : > { %v1056_v18 = vadd.f32 %v1970_v17, %v2502_v62  ;;  %v986_v19 = vpop.f32.mrb[5].mxu0 }
 0x19a   : > { %v1055_v20 = vadd.f32 %v2502_v62, %v986_v19 }
 0x19b   : > { %v1072_v22 = vmax.f32 %v1056_v18, 0.0 }
 0x19c   : > { %v1071_v21 = vmax.f32 %v1055_v20, 0.0 }
 0x19e   : > { %2000 = vmatprep.mubr.msk.f32.mxu1 %vm1090_vm13, %v1071_v21 }
 0x19f   : > { %2001 = vmatmul.mubr.msk.f32.gmra.mrb[14].mxu1 %vm1090_vm13, %v1072_v22 }
 0x1ab   : > { %v1973_v23 = vpop.f32.mrb[6].mxu0 }
 0x1ac   : > { %v1002_v24 = vadd.f32 %v1973_v23, %v1937_v55  ;;  %v996_v25 = vpop.f32.mrb[7].mxu0 }
 0x1ad   : > { %v997_v26 = vadd.f32 %v996_v25, %v798_v56 }
 0x1ae   : > { %v1058_v27 = vadd.f32 %v2502_v62, %v1002_v24 }
 0x1af   : > { %v1057_v28 = vadd.f32 %v2502_v62, %v997_v26 }
 0x1b0   : > { %v1074_v30 = vmax.f32 %v1058_v27, 0.0 }
 0x1b1   : > { %v1073_v29 = vmax.f32 %v1057_v28, 0.0 }
 0x1b3   : > { %2003 = vmatprep.mubr.msk.f32.mxu1 %vm1090_vm13, %v1073_v29 }
 0x1b4   : > { %2004 = vmatmul.mubr.msk.f32.gmra.mrb[16].mxu1 %vm1090_vm13, %v1074_v30 }
 0x1be   : > { %v1976_v31 = vpop.f32.mrb[8].mxu0 }
 0x1bf   : > { %v1012_v32 = vadd.f32 %v1976_v31, %v1940_v57  ;;  %v1006_v33 = vpop.f32.mrb[9].mxu0 }
 0x1c0   : > { %v1007_v34 = vadd.f32 %v1006_v33, %v808_v58 }
 0x1c1   : > { %v1060_v35 = vadd.f32 %v2502_v62, %v1012_v32 }
 0x1c2   : > { %v1059_v36 = vadd.f32 %v2502_v62, %v1007_v34 }
 0x1c3   : > { %v1076_v38 = vmax.f32 %v1060_v35, 0.0 }
 0x1c4   : > { %v1075_v37 = vmax.f32 %v1059_v36, 0.0 }
 0x1c6   : > { %2006 = vmatprep.mubr.msk.f32.mxu1 %vm1090_vm13, %v1075_v37 }
 0x1c7   : > { %2007 = vmatmul.mubr.msk.f32.gmra.mrb[18].mxu1 %vm1090_vm13, %v1076_v38 }
 0x1d1   : > { %v1979_v39 = vpop.f32.mrb[10].mxu0 }
 0x1d2   : > { %v1022_v40 = vadd.f32 %v1979_v39, %v1943_v59  ;;  %v1016_v41 = vpop.f32.mrb[11].mxu0 }
 0x1d3   : > { %v1017_v42 = vadd.f32 %v1016_v41, %v818_v61 }
 0x1d4   : > { %v1062_v43 = vadd.f32 %v2502_v62, %v1022_v40  ;;  %v2232_v40 = vmov 0.0|0.0  }
 0x1d5   : > { %v1061_v44 = vadd.f32 %v2502_v62, %v1017_v42  ;;  %2115 = vmatprep.subr.bf16.mxu0 %v2232_v40 }
 0x1d6   : > { %v1078_v49 = vmax.f32 %v1062_v43, 0.0 }
 0x1d7   : > { %v1077_v48 = vmax.f32 %v1061_v44, 0.0 }
 0x1d9   : > { %2009 = vmatprep.mubr.msk.f32.mxu1 %vm1090_vm13, %v1077_v48 }
 0x1da   : > { %2010 = vmatmul.mubr.msk.f32.gmra.mrb[20].mxu1 %vm1090_vm13, %v1078_v49 }
 0x1e4   : > { %v1982_v51 = vpop.f32.mrb[12].mxu0 }
 0x1e5   : > { %v1032_v52 = vadd.f32 %v1982_v51, %v2505_v50  ;;  %v1026_v53 = vpop.f32.mrb[13].mxu0 }
 0x1e6   : > { %v1027_v54 = vadd.f32 %v1026_v53, %v2507_v63 }
 0x1e7   : > { %v1064_v55 = vadd.f32 %v2502_v62, %v1032_v52 }
 0x1e8   : > { %v1063_v56 = vadd.f32 %v2502_v62, %v1027_v54  ;;  %v2579_v54 = vpop.permute.xlu1 %1304 }
 0x1e9   : > { %v1080_v58 = vmax.f32 %v1064_v55, 0.0 }
 0x1ea   : > { %v1079_v57 = vmax.f32 %v1063_v56, 0.0 }
 0x1ec   : > { %2012 = vmatprep.mubr.msk.f32.mxu1 %vm1090_vm13, %v1079_v57 }
 0x1ed   : > { %2013 = vmatmul.mubr.msk.f32.gmra.mrb[22].mxu1 %vm1090_vm13, %v1080_v58 }
 0x1f7   : > { %v1985_v59 = vpop.f32.mrb[14].mxu0 }
 0x1f8   : > { %v1042_v61 = vadd.f32 %v1985_v59, %v2509_v0  ;;  %v1036_v2 = vpop.f32.mrb[15].mxu0 }
 0x1f9   : > { %v1037_v3 = vadd.f32 %v1036_v2, %v2511_v1 }
 0x1fa   : > { %v1066_v50 = vadd.f32 %v2502_v62, %v1042_v61 }
 0x1fb   : > { %v1065_v63 = vadd.f32 %v2502_v62, %v1037_v3 }
 0x1fc   : > { %v1082_v5 = vmax.f32 %v1066_v50, 0.0 }
 0x1fd   : > { %v1081_v4 = vmax.f32 %v1065_v63, 0.0 }
 0x1ff   : > { %2015 = vmatprep.mubr.msk.f32.mxu1 %vm1090_vm13, %v1081_v4 }
 0x200   : > { %2016 = vmatmul.mubr.msk.f32.gmra.mrb[24].mxu1 %vm1090_vm13, %v1082_v5 }
 0x255   : > { %v1996_v7 = vpop.f32.mrb[10].mxu1 }
 0x256   : > { %v1211_v8 = vadd.f32 %v1996_v7, %v1088_v6  ;;  %v1205_v0 = vpop.f32.mrb[11].mxu1  ;;  %v1517_v7 = vld [vmem:[%s2650_s8] sm:$0x3] }
 0x257   : > { %v1206_v9 = vadd.f32 %v1205_v0, %v1088_v6  ;;  %1520 = vperm.xlu0 %2212, %v1517_v7  }
 0x258   : > { %v1285_v1 = vmax.f32 %v1211_v8, 0.0 }
 0x259   : > { %v1284_v10 = vmax.f32 %v1206_v9, 0.0 }
 0x25b   : > { %2026 = vmatprep.mubr.msk.f32.mxu1 %vm1090_vm13, %v1284_v10 }
 0x25c   : > { %2027 = vmatmul.mubr.msk.f32.vlgmr.msra.gmra.mrb[26].mxu1 %vm1090_vm13, %v1285_v1 }
 0x25f   : > { %v1999_v11 = vpop.f32.mrb[12].mxu1 }
 0x260   : > { %v1221_v12 = vadd.f32 %v1999_v11, %v1088_v6  ;;  %v1215_v13 = vpop.f32.mrb[13].mxu1 }
 0x261   : > { %v1216_v14 = vadd.f32 %v1215_v13, %v1088_v6 }
 0x262   : > { %v1287_v16 = vmax.f32 %v1221_v12, 0.0 }
 0x263   : > { %v1286_v15 = vmax.f32 %v1216_v14, 0.0 }
 0x265   : > { %2029 = vmatprep.mubr.msk.f32.mxu1 %vm1090_vm13, %v1286_v15 }
 0x266   : > { %2030 = vmatmul.mubr.msk.f32.gmra.mrb[28].mxu1 %vm1090_vm13, %v1287_v16 }
 0x272   : > { %v2002_v62 = vpop.f32.mrb[14].mxu1 }
 0x273   : > { %v1231_v17 = vadd.f32 %v2002_v62, %v1088_v6  ;;  %v1225_v18 = vpop.f32.mrb[15].mxu1 }
 0x274   : > { %v1226_v19 = vadd.f32 %v1225_v18, %v1088_v6 }
 0x275   : > { %v1289_v21 = vmax.f32 %v1231_v17, 0.0 }
 0x276   : > { %v1288_v20 = vmax.f32 %v1226_v19, 0.0 }
 0x278   : > { %2032 = vmatprep.mubr.msk.f32.mxu1 %vm1090_vm13, %v1288_v20 }
 0x279   : > { %2033 = vmatmul.mubr.msk.f32.gmra.mrb[30].mxu1 %vm1090_vm13, %v1289_v21 }
 0x287   : > { %v2005_v22 = vpop.f32.mrb[16].mxu1 }
 0x288   : > { %v1241_v23 = vadd.f32 %v2005_v22, %v1088_v6  ;;  %v1235_v24 = vpop.f32.mrb[17].mxu1 }
 0x289   : > { %v1236_v25 = vadd.f32 %v1235_v24, %v1088_v6 }
 0x28a   : > { %v1291_v27 = vmax.f32 %v1241_v23, 0.0 }
 0x28b   : > { %v1290_v26 = vmax.f32 %v1236_v25, 0.0 }
 0x28d   : > { %2035 = vmatprep.mubr.msk.f32.mxu1 %vm1090_vm13, %v1290_v26 }
 0x28e   : > { %2036 = vmatmul.mubr.msk.f32.gmra.mrb[32].mxu1 %vm1090_vm13, %v1291_v27 }
 0x29a   : > { %v2008_v28 = vpop.f32.mrb[18].mxu1 }
 0x29b   : > { %v1251_v29 = vadd.f32 %v2008_v28, %v1088_v6  ;;  %v1245_v30 = vpop.f32.mrb[19].mxu1 }
 0x29c   : > { %v1246_v31 = vadd.f32 %v1245_v30, %v1088_v6 }
 0x29d   : > { %v1293_v33 = vmax.f32 %v1251_v29, 0.0 }
 0x29e   : > { %v1292_v32 = vmax.f32 %v1246_v31, 0.0 }
 0x2a0   : > { %2038 = vmatprep.mubr.msk.f32.mxu1 %vm1090_vm13, %v1292_v32 }
 0x2a1   : > { %2039 = vmatmul.mubr.msk.f32.gmra.mrb[34].mxu1 %vm1090_vm13, %v1293_v33 }
 0x2ad   : > { %v2011_v34 = vpop.f32.mrb[20].mxu1 }
 0x2ae   : > { %v1261_v35 = vadd.f32 %v2011_v34, %v1088_v6  ;;  %v1255_v36 = vpop.f32.mrb[21].mxu1 }
 0x2af   : > { %v1256_v37 = vadd.f32 %v1255_v36, %v1088_v6 }
 0x2b0   : > { %v1295_v39 = vmax.f32 %v1261_v35, 0.0 }
 0x2b1   : > { %v1294_v38 = vmax.f32 %v1256_v37, 0.0 }
 0x2b3   : > { %2041 = vmatprep.mubr.msk.f32.mxu1 %vm1090_vm13, %v1294_v38 }
 0x2b4   : > { %2042 = vmatmul.mubr.msk.f32.gmra.mrb[36].mxu1 %vm1090_vm13, %v1295_v39 }
 0x2c0   : > { %v2014_v41 = vpop.f32.mrb[22].mxu1 }
 0x2c1   : > { %v1271_v42 = vadd.f32 %v2014_v41, %v1088_v6  ;;  %v1265_v43 = vpop.f32.mrb[23].mxu1 }
 0x2c2   : > { %v1266_v44 = vadd.f32 %v1265_v43, %v1088_v6 }
 0x2c3   : > { %v1297_v46 = vmax.f32 %v1271_v42, 0.0 }
 0x2c4   : > { %v1296_v45 = vmax.f32 %v1266_v44, 0.0 }
 0x2c6   : > { %2044 = vmatprep.mubr.msk.f32.mxu1 %vm1090_vm13, %v1296_v45 }
 0x2c7   : > { %2045 = vmatmul.mubr.msk.f32.gmra.mrb[38].mxu1 %vm1090_vm13, %v1297_v46 }
 0x2d3   : > { %v2017_v47 = vpop.f32.mrb[24].mxu1 }
 0x2d4   : > { %v1281_v48 = vadd.f32 %v2017_v47, %v1088_v6  ;;  %v1275_v49 = vpop.f32.mrb[25].mxu1 }
 0x2d5   : > { %v1276_v51 = vadd.f32 %v1275_v49, %v1088_v6  ;;  %v1516_v49 = vld [vmem:[%s2648_s6] sm:$0x3] }
 0x2d6   : > { %v1299_v53 = vmax.f32 %v1281_v48, 0.0 }
 0x2d7   : > { %v1298_v52 = vmax.f32 %v1276_v51, 0.0 }
 0x2d9   : > { %2047 = vmatprep.mubr.msk.f32.mxu1 %vm1090_vm13, %v1298_v52 }
 0x2da   : > { %2048 = vmatmul.mubr.msk.f32.gmra.mrb[40].mxu1 %vm1090_vm13, %v1299_v53 }
 0x32f   : > { %v2028_v55 = vpop.f32.mrb[26].mxu1 }
 0x330   : > { %v1427_v56 = vadd.f32 %v2028_v55, %v2579_v54  ;;  %v1421_v57 = vpop.f32.mrb[27].mxu1 }
 0x331   : > { %v1422_v58 = vadd.f32 %v1421_v57, %v2579_v54 }
 0x332   : > { %v1501_v59 = vmax.f32 %v1427_v56, 0.0 }
 0x333   : > { %v1500_v61 = vmax.f32 %v1422_v58, 0.0 }
 0x335   : > { %v2116_v3 = vpack.c.bf16 %v1501_v59, %v1500_v61 }
 0x337   : > { %2118 = vmatpush3.bf16.xpose.msk.msra.mxu0 %vm2585_vm10, %v2116_v3 }
 0x338   : > { %2119 = vmatprep.subr.bf16.mxu0 %v2232_v40 }
 0x339   : > { %v2031_v50 = vpop.f32.mrb[28].mxu1 }
 0x33a   : > { %v1437_v63 = vadd.f32 %v2031_v50, %v2579_v54  ;;  %v1431_v4 = vpop.f32.mrb[29].mxu1 }
 0x33b   : > { %v1432_v5 = vadd.f32 %v1431_v4, %v2579_v54 }
 0x33c   : > { %v1503_v6 = vmax.f32 %v1437_v63, 0.0 }
 0x33d   : > { %v1502_v8 = vmax.f32 %v1432_v5, 0.0 }
 0x33f   : > { %v2120_v0 = vpack.c.bf16 %v1503_v6, %v1502_v8 }
 0x341   : > { %2122 = vmatpush3.bf16.xpose.msk.msra.mxu0 %vm2585_vm10, %v2120_v0 }
 0x342   : > { %2123 = vmatprep.subr.bf16.mxu0 %v2232_v40 }
 0x34c   : > { %v2034_v60 = vpop.f32.mrb[30].mxu1 }
 0x34d   : > { %v1447_v9 = vadd.f32 %v2034_v60, %v2579_v54  ;;  %v1441_v10 = vpop.f32.mrb[31].mxu1 }
 0x34e   : > { %v1442_v1 = vadd.f32 %v1441_v10, %v2579_v54 }
 0x34f   : > { %v1505_v11 = vmax.f32 %v1447_v9, 0.0 }
 0x350   : > { %v1504_v12 = vmax.f32 %v1442_v1, 0.0 }
 0x352   : > { %v2124_v13 = vpack.c.bf16 %v1505_v11, %v1504_v12 }
 0x354   : > { %2126 = vmatpush3.bf16.xpose.msk.msra.mxu0 %vm2585_vm10, %v2124_v13 }
 0x355   : > { %2127 = vmatprep.subr.bf16.mxu0 %v2232_v40 }
 0x361   : > { %v2037_v14 = vpop.f32.mrb[32].mxu1 }
 0x362   : > { %v1457_v15 = vadd.f32 %v2037_v14, %v2579_v54  ;;  %v1451_v16 = vpop.f32.mrb[33].mxu1 }
 0x363   : > { %v1452_v62 = vadd.f32 %v1451_v16, %v2579_v54 }
 0x364   : > { %v1507_v17 = vmax.f32 %v1457_v15, 0.0 }
 0x365   : > { %v1506_v18 = vmax.f32 %v1452_v62, 0.0 }
 0x367   : > { %v2128_v19 = vpack.c.bf16 %v1507_v17, %v1506_v18 }
 0x369   : > { %2130 = vmatpush3.bf16.xpose.msk.msra.mxu0 %vm2585_vm10, %v2128_v19 }
 0x36a   : > { %2131 = vmatprep.subr.bf16.mxu0 %v2232_v40 }
 0x374   : > { %v2040_v20 = vpop.f32.mrb[34].mxu1 }
 0x375   : > { %v1467_v21 = vadd.f32 %v2040_v20, %v2579_v54  ;;  %v1461_v22 = vpop.f32.mrb[35].mxu1 }
 0x376   : > { %v1462_v23 = vadd.f32 %v1461_v22, %v2579_v54 }
 0x377   : > { %v1509_v24 = vmax.f32 %v1467_v21, 0.0 }
 0x378   : > { %v1508_v25 = vmax.f32 %v1462_v23, 0.0 }
 0x37a   : > { %v2132_v26 = vpack.c.bf16 %v1509_v24, %v1508_v25 }
 0x37c   : > { %2134 = vmatpush3.bf16.xpose.msk.msra.mxu0 %vm2585_vm10, %v2132_v26 }
 0x37d   : > { %2135 = vmatprep.subr.bf16.mxu0 %v2232_v40 }
 0x387   : > { %v2043_v27 = vpop.f32.mrb[36].mxu1 }
 0x388   : > { %v1477_v28 = vadd.f32 %v2043_v27, %v2579_v54  ;;  %v1471_v29 = vpop.f32.mrb[37].mxu1 }
 0x389   : > { %v1472_v30 = vadd.f32 %v1471_v29, %v2579_v54 }
 0x38a   : > { %v1511_v31 = vmax.f32 %v1477_v28, 0.0 }
 0x38b   : > { %v1510_v32 = vmax.f32 %v1472_v30, 0.0 }
 0x38d   : > { %v2136_v33 = vpack.c.bf16 %v1511_v31, %v1510_v32 }
 0x38f   : > { %2138 = vmatpush3.bf16.xpose.msk.msra.mxu0 %vm2585_vm10, %v2136_v33 }
 0x390   : > { %2139 = vmatprep.subr.bf16.mxu0 %v2232_v40 }
 0x39a   : > { %v2046_v34 = vpop.f32.mrb[38].mxu1 }
 0x39b   : > { %v1487_v35 = vadd.f32 %v2046_v34, %v2579_v54  ;;  %v1481_v36 = vpop.f32.mrb[39].mxu1 }
 0x39c   : > { %v1482_v37 = vadd.f32 %v1481_v36, %v2579_v54 }
 0x39d   : > { %v1513_v38 = vmax.f32 %v1487_v35, 0.0 }
 0x39e   : > { %v1512_v39 = vmax.f32 %v1482_v37, 0.0 }
 0x3a0   : > { %v2140_v41 = vpack.c.bf16 %v1513_v38, %v1512_v39 }
 0x3a2   : > { %2142 = vmatpush3.bf16.xpose.msk.msra.mxu0 %vm2585_vm10, %v2140_v41 }
 0x3a3   : > { %2143 = vmatprep.subr.bf16.mxu0 %v2232_v40  ;;  %v1521_v40 = vpop.permute.xlu0 %1520 }
 0x3ad   : > { %v2049_v42 = vpop.f32.mrb[40].mxu1 }
 0x3ae   : > { %v1497_v43 = vadd.f32 %v2049_v42, %v2579_v54  ;;  %v1491_v44 = vpop.f32.mrb[41].mxu1 }
 0x3af   : > { %v1492_v45 = vadd.f32 %v1491_v44, %v2579_v54 }
 0x3b0   : > { %v1515_v46 = vmax.f32 %v1497_v43, 0.0 }
 0x3b1   : > { %v1514_v47 = vmax.f32 %v1492_v45, 0.0 }
 0x3b3   : > { %v2144_v48 = vpack.c.bf16 %v1515_v46, %v1514_v47 }
 0x3b5   : > { %2146 = vmatpush3.bf16.xpose.msk.msra.mxu0 %vm2585_vm10, %v2144_v48 }
 0x3bc   : > { %2083 = vmatmul.mubr.msk.f32.vlgmr.msra.gmra.mrb[16].mxu0 %vm1523_vm9, %v1516_v49 }
 0x48f   : > { %v1641_v51 = vpop.f32.mrb[16].mxu0 }
 0x490   : > { %v1642_v52 = vadd.f32 %v1641_v51, %v1521_v40  ;;  %v2084_v53 = vpop.f32.mrb[17].mxu0 }
 0x492   : > { %v1645_v55 = vsub.f32 0.0, %v1642_v52 }
 0x494   : > { %v1646_v56 = vmul.f32 1.442695, %v1645_v55 }
 0x496   : > { %2213 = vpow2.f32 %v1646_v56 }
 0x4a0   : > { %v2214_v54 = vpop.eup %2213 }
 0x4a1   : > { %v1648_v57 = vadd.f32 1.0, %v2214_v54 }
 0x4a3   : > { %2215 = vrcp.f32 %v1648_v57 }
 0x4ad   : > { %v2216_v58 = vpop.eup %2215 }
 0x4ae   : > { %1651 = vst [vmem:[%s354_s22] sm:$0x3] %v2216_v58 }
 0x4af PF: > { %s19_s30 = sadd.s32 1, %s2223_s30  }
 0x4b0   : > { %p16_p5 = scmp.ge.s32.totalorder %s19_s30, 4  }
 0x4b2   :  { %18 = sbr.rel (!%p16_p5) target bundleno = 1 (0x1), region = 89 }

</bundles_post_ra>
